<compile_context>
chip_gen: v7x
topology: tpu7x:2x2x1
jax: 0.10.0
libtpu: 0.0.40
codegen_flags: <defaults>
</compile_context>

<pallas_src>
import jax
import jax.numpy as jnp
from jax.experimental import pallas as pl
from jax.experimental.pallas import tpu as pltpu

H = 32      # hidden_dim
V = 64      # output_dim (vocab size)
S = 8       # encoder sequence length
B = 2       # batch size
PACK = 128  # lane-dense packed output width (V + H + S = 104, padded to 128)


def _decoder_step_kernel(tok_ref, hid_ref, enc_ref, emb_tbl_ref,
                         w_ih_ref, w_hh_ref, b_ih_ref, b_hh_ref,
                         w_fc_ref, b_fc_ref, out_ref):
    # --- embedding lookup (dropout = identity / eval mode) ---
    tok = tok_ref[...]                                              # (B, 1) int32
    onehot = (jax.lax.broadcasted_iota(jnp.int32, (B, V), 1) == tok).astype(jnp.float32)
    emb = jnp.dot(onehot, emb_tbl_ref[...],
                  preferred_element_type=jnp.float32)               # (B, H)

    h = hid_ref[0]                                                  # (B, H)
    enc = enc_ref[...]                                              # (B, S, H)

    # --- dot-product (Luong) attention, lane-aligned contraction (no transpose) ---
    scores = jnp.sum(enc * h[:, None, :], axis=-1)                  # (B, S)
    scores = scores - jnp.max(scores, axis=-1, keepdims=True)
    e = jnp.exp(scores)
    inv = pl.reciprocal(jnp.sum(e, axis=-1, keepdims=True), approx=False)
    attn = e * inv                                                  # (B, S)
    context = jnp.sum(attn[:, :, None] * enc, axis=1)               # (B, H)

    # --- fused GRU cell: ONE input dot + ONE hidden dot; gate order r | z | n ---
    rnn_in = jnp.concatenate([emb, context], axis=-1)               # (B, 2H)
    gi = jnp.dot(rnn_in, w_ih_ref[...],
                 preferred_element_type=jnp.float32) + b_ih_ref[...]  # (B, 3H)
    gh = jnp.dot(h, w_hh_ref[...],
                 preferred_element_type=jnp.float32) + b_hh_ref[...]  # (B, 3H)
    r = jax.nn.sigmoid(gi[:, :H] + gh[:, :H])
    z = jax.nn.sigmoid(gi[:, H:2 * H] + gh[:, H:2 * H])
    n = jnp.tanh(gi[:, 2 * H:] + r * gh[:, 2 * H:])
    h_new = (1.0 - z) * n + z * h                                   # (B, H)

    # --- output projection (fc) ---
    pred = jnp.dot(h_new, w_fc_ref[...],
                   preferred_element_type=jnp.float32) + b_fc_ref[...]  # (B, V)

    # --- pack everything into one lane-dense (B, 128) block: [pred | h_new | attn | pad] ---
    pad = jnp.zeros((B, PACK - V - H - S), jnp.float32)
    out_ref[...] = jnp.concatenate([pred, h_new, attn, pad], axis=-1)


@jax.jit
def decoder_forward(tokens, hidden, encoder_outputs, p):
    vmem = pl.BlockSpec(memory_space=pltpu.MemorySpace.VMEM)
    packed = pl.pallas_call(
        _decoder_step_kernel,
        out_shape=jax.ShapeDtypeStruct((B, PACK), jnp.float32),
        in_specs=[vmem] * 10,
        out_specs=vmem,
    )(tokens, hidden, encoder_outputs, p["emb_table"],
      p["w_ih"], p["w_hh"], p["b_ih"], p["b_hh"], p["w_fc"], p["b_fc"])

    prediction = packed[:, :V]                                  # (B, V)
    hidden_new = packed[None, :, V:V + H]                       # (1, B, H)
    attention_weights = packed[:, V + H:V + H + S][:, None, :]  # (B, 1, S)
    return prediction, hidden_new, attention_weights


def decoder_reference(tokens, hidden, encoder_outputs, p):
    """Pure-JAX reference with identical semantics (for correctness check)."""
    emb = p["emb_table"][tokens[:, 0]]                     # (B, H)
    h = hidden[0]                                          # (B, H)
    scores = jnp.einsum("bh,bsh->bs", h, encoder_outputs)  # (B, S)
    w = jax.nn.softmax(scores, axis=-1)
    ctx = jnp.einsum("bs,bsh->bh", w, encoder_outputs)     # (B, H)
    x = jnp.concatenate([emb, ctx], axis=-1)               # (B, 2H)
    gi = x @ p["w_ih"] + p["b_ih"]
    gh = h @ p["w_hh"] + p["b_hh"]
    r = jax.nn.sigmoid(gi[:, :H] + gh[:, :H])
    z = jax.nn.sigmoid(gi[:, H:2 * H] + gh[:, H:2 * H])
    n = jnp.tanh(gi[:, 2 * H:] + r * gh[:, 2 * H:])
    h_new = (1.0 - z) * n + z * h
    pred = h_new @ p["w_fc"] + p["b_fc"]
    return pred, h_new[None], w[:, None, :]


def init_params(key):
    ks = jax.random.split(key, 8)
    bound = 1.0 / jnp.sqrt(H)
    u = lambda k, shape: jax.random.uniform(k, shape, jnp.float32, -bound, bound)
    return {
        "emb_table": jax.random.normal(ks[0], (V, H), jnp.float32),
        # fused GRU weights: rows [:H] multiply the embedded token, rows [H:]
        # multiply the attention context; columns are [r | z | n] gates.
        "w_ih": u(ks[1], (2 * H, 3 * H)),
        "w_hh": u(ks[2], (H, 3 * H)),
        "b_ih": u(ks[3], (1, 3 * H)),
        "b_hh": u(ks[4], (1, 3 * H)),
        "w_fc": u(ks[5], (H, V)),
        "b_fc": u(ks[6], (1, V)),
    }


if __name__ == "__main__":
    key = jax.random.PRNGKey(0)
    k_tok, k_hid, k_enc, k_par = jax.random.split(key, 4)

    tokens = jax.random.randint(k_tok, (B, 1), 0, V, dtype=jnp.int32)
    hidden = jax.random.normal(k_hid, (1, B, H), jnp.float32)
    encoder_outputs = jax.random.normal(k_enc, (B, S, H), jnp.float32)
    params = init_params(k_par)

    pred, h_new, attn = jax.block_until_ready(
        decoder_forward(tokens, hidden, encoder_outputs, params))

    pred_ref, h_ref, attn_ref = decoder_reference(tokens, hidden, encoder_outputs, params)
    assert pred.shape == (B, V) and h_new.shape == (1, B, H) and attn.shape == (B, 1, S)
    assert jnp.allclose(pred, pred_ref, atol=1e-5, rtol=1e-5)
    assert jnp.allclose(h_new, h_ref, atol=1e-5, rtol=1e-5)
    assert jnp.allclose(attn, attn_ref, atol=1e-5, rtol=1e-5)

    print("KERNEL_OK")
</pallas_src>

<mosaic_0001>
module attributes {stable_mosaic.version = 11 : i64} {
  func.func @_decoder_step_kernel(%arg0: memref<2x1xi32, #tpu.memory_space<vmem>>, %arg1: memref<1x2x32xf32, #tpu.memory_space<vmem>>, %arg2: memref<2x8x32xf32, #tpu.memory_space<vmem>>, %arg3: memref<64x32xf32, #tpu.memory_space<vmem>>, %arg4: memref<64x96xf32, #tpu.memory_space<vmem>>, %arg5: memref<32x96xf32, #tpu.memory_space<vmem>>, %arg6: memref<1x96xf32, #tpu.memory_space<vmem>>, %arg7: memref<1x96xf32, #tpu.memory_space<vmem>>, %arg8: memref<32x64xf32, #tpu.memory_space<vmem>>, %arg9: memref<1x64xf32, #tpu.memory_space<vmem>>, %arg10: memref<2x128xf32, #tpu.memory_space<vmem>>) attributes {dimension_semantics = [], scalar_prefetch = 0 : i64, scratch_operands = 0 : i64, tpu.core_type = #tpu.core_type<tc>} {
    %c0 = arith.constant 0 : index
    %c0_0 = arith.constant 0 : index
    %0 = vector.load %arg0[%c0, %c0_0] : memref<2x1xi32, #tpu.memory_space<vmem>>, vector<2x1xi32>
    %1 = tpu.iota {dimensions = array<i32: 1>} : vector<2x64xi32>
    %2 = vector.broadcast %0 : vector<2x1xi32> to vector<2x64xi32>
    %3 = arith.cmpi eq, %1, %2 : vector<2x64xi32>
    %4 = arith.extui %3 : vector<2x64xi1> to vector<2x64xi32>
    %5 = arith.sitofp %4 : vector<2x64xi32> to vector<2x64xf32>
    %c0_1 = arith.constant 0 : index
    %c0_2 = arith.constant 0 : index
    %6 = vector.load %arg3[%c0_1, %c0_2] : memref<64x32xf32, #tpu.memory_space<vmem>>, vector<64x32xf32>
    %cst = arith.constant dense<0.000000e+00> : vector<2x32xf32>
    %7 = tpu.matmul %5, %6, %cst {dimension_numbers = #tpu.dot_dimension_numbers<[1], [0], [0], [1], [0, 0, 1, 1], [], []>} : vector<2x64xf32>, vector<64x32xf32>, vector<2x32xf32> -> vector<2x32xf32>
    %c0_3 = arith.constant 0 : index
    %c0_4 = arith.constant 0 : index
    %c0_5 = arith.constant 0 : index
    %8 = vector.load %arg1[%c0_3, %c0_4, %c0_5] : memref<1x2x32xf32, #tpu.memory_space<vmem>>, vector<1x2x32xf32>
    %9 = vector.shape_cast %8 : vector<1x2x32xf32> to vector<2x32xf32>
    %c0_6 = arith.constant 0 : index
    %c0_7 = arith.constant 0 : index
    %c0_8 = arith.constant 0 : index
    %10 = vector.load %arg2[%c0_6, %c0_7, %c0_8] : memref<2x8x32xf32, #tpu.memory_space<vmem>>, vector<2x8x32xf32>
    %11 = vector.shape_cast %9 : vector<2x32xf32> to vector<2x1x32xf32>
    %12 = vector.broadcast %11 : vector<2x1x32xf32> to vector<2x8x32xf32>
    %13 = arith.mulf %10, %12 : vector<2x8x32xf32>
    %cst_9 = arith.constant dense<0.000000e+00> : vector<2x8xf32>
    %14 = vector.multi_reduction <add>, %13, %cst_9 [2] : vector<2x8x32xf32> to vector<2x8xf32>
    %cst_10 = arith.constant dense<0xFF800000> : vector<2xf32>
    %15 = vector.multi_reduction <maximumf>, %14, %cst_10 [1] : vector<2x8xf32> to vector<2xf32>
    %16 = vector.shape_cast %15 : vector<2xf32> to vector<2x1xf32>
    %17 = vector.broadcast %16 : vector<2x1xf32> to vector<2x8xf32>
    %18 = arith.subf %14, %17 : vector<2x8xf32>
    %19 = math.exp %18 : vector<2x8xf32>
    %cst_11 = arith.constant dense<0.000000e+00> : vector<2xf32>
    %20 = vector.multi_reduction <add>, %19, %cst_11 [1] : vector<2x8xf32> to vector<2xf32>
    %21 = vector.shape_cast %20 : vector<2xf32> to vector<2x1xf32>
    %22 = tpu.reciprocal %21 : vector<2x1xf32> -> vector<2x1xf32>
    %23 = vector.broadcast %22 : vector<2x1xf32> to vector<2x8xf32>
    %24 = arith.mulf %19, %23 : vector<2x8xf32>
    %25 = vector.shape_cast %24 : vector<2x8xf32> to vector<2x8x1xf32>
    %26 = vector.broadcast %25 : vector<2x8x1xf32> to vector<2x8x32xf32>
    %27 = arith.mulf %26, %10 : vector<2x8x32xf32>
    %cst_12 = arith.constant dense<0.000000e+00> : vector<2x32xf32>
    %28 = vector.multi_reduction <add>, %27, %cst_12 [1] : vector<2x8x32xf32> to vector<2x32xf32>
    %29 = tpu.concatenate %7, %28 in 1 : vector<2x32xf32>, vector<2x32xf32> -> vector<2x64xf32>
    %c0_13 = arith.constant 0 : index
    %c0_14 = arith.constant 0 : index
    %30 = vector.load %arg4[%c0_13, %c0_14] : memref<64x96xf32, #tpu.memory_space<vmem>>, vector<64x96xf32>
    %cst_15 = arith.constant dense<0.000000e+00> : vector<2x96xf32>
    %31 = tpu.matmul %29, %30, %cst_15 {dimension_numbers = #tpu.dot_dimension_numbers<[1], [0], [0], [1], [0, 0, 1, 1], [], []>} : vector<2x64xf32>, vector<64x96xf32>, vector<2x96xf32> -> vector<2x96xf32>
    %c0_16 = arith.constant 0 : index
    %c0_17 = arith.constant 0 : index
    %32 = vector.load %arg6[%c0_16, %c0_17] : memref<1x96xf32, #tpu.memory_space<vmem>>, vector<1x96xf32>
    %33 = vector.broadcast %32 : vector<1x96xf32> to vector<2x96xf32>
    %34 = arith.addf %31, %33 : vector<2x96xf32>
    %c0_18 = arith.constant 0 : index
    %c0_19 = arith.constant 0 : index
    %35 = vector.load %arg5[%c0_18, %c0_19] : memref<32x96xf32, #tpu.memory_space<vmem>>, vector<32x96xf32>
    %cst_20 = arith.constant dense<0.000000e+00> : vector<2x96xf32>
    %36 = tpu.matmul %9, %35, %cst_20 {dimension_numbers = #tpu.dot_dimension_numbers<[1], [0], [0], [1], [0, 0, 1, 1], [], []>} : vector<2x32xf32>, vector<32x96xf32>, vector<2x96xf32> -> vector<2x96xf32>
    %c0_21 = arith.constant 0 : index
    %c0_22 = arith.constant 0 : index
    %37 = vector.load %arg7[%c0_21, %c0_22] : memref<1x96xf32, #tpu.memory_space<vmem>>, vector<1x96xf32>
    %38 = vector.broadcast %37 : vector<1x96xf32> to vector<2x96xf32>
    %39 = arith.addf %36, %38 : vector<2x96xf32>
    %40 = vector.extract_strided_slice %34 {offsets = [0, 0], sizes = [2, 32], strides = [1, 1]} : vector<2x96xf32> to vector<2x32xf32>
    %41 = vector.extract_strided_slice %39 {offsets = [0, 0], sizes = [2, 32], strides = [1, 1]} : vector<2x96xf32> to vector<2x32xf32>
    %42 = arith.addf %40, %41 : vector<2x32xf32>
    %43 = arith.negf %42 : vector<2x32xf32>
    %44 = math.exp %43 : vector<2x32xf32>
    %cst_23 = arith.constant 1.000000e+00 : f32
    %45 = vector.broadcast %cst_23 : f32 to vector<2x32xf32>
    %46 = arith.addf %45, %44 : vector<2x32xf32>
    %47 = arith.divf %45, %46 : vector<2x32xf32>
    %48 = vector.extract_strided_slice %34 {offsets = [0, 32], sizes = [2, 32], strides = [1, 1]} : vector<2x96xf32> to vector<2x32xf32>
    %49 = vector.extract_strided_slice %39 {offsets = [0, 32], sizes = [2, 32], strides = [1, 1]} : vector<2x96xf32> to vector<2x32xf32>
    %50 = arith.addf %48, %49 : vector<2x32xf32>
    %51 = arith.negf %50 : vector<2x32xf32>
    %52 = math.exp %51 : vector<2x32xf32>
    %cst_24 = arith.constant 1.000000e+00 : f32
    %53 = vector.broadcast %cst_24 : f32 to vector<2x32xf32>
    %54 = arith.addf %53, %52 : vector<2x32xf32>
    %55 = arith.divf %53, %54 : vector<2x32xf32>
    %56 = vector.extract_strided_slice %34 {offsets = [0, 64], sizes = [2, 32], strides = [1, 1]} : vector<2x96xf32> to vector<2x32xf32>
    %57 = vector.extract_strided_slice %39 {offsets = [0, 64], sizes = [2, 32], strides = [1, 1]} : vector<2x96xf32> to vector<2x32xf32>
    %58 = arith.mulf %47, %57 : vector<2x32xf32>
    %59 = arith.addf %56, %58 : vector<2x32xf32>
    %60 = math.tanh %59 : vector<2x32xf32>
    %cst_25 = arith.constant 1.000000e+00 : f32
    %61 = vector.broadcast %cst_25 : f32 to vector<2x32xf32>
    %62 = arith.subf %61, %55 : vector<2x32xf32>
    %63 = arith.mulf %62, %60 : vector<2x32xf32>
    %64 = arith.mulf %55, %9 : vector<2x32xf32>
    %65 = arith.addf %63, %64 : vector<2x32xf32>
    %c0_26 = arith.constant 0 : index
    %c0_27 = arith.constant 0 : index
    %66 = vector.load %arg8[%c0_26, %c0_27] : memref<32x64xf32, #tpu.memory_space<vmem>>, vector<32x64xf32>
    %cst_28 = arith.constant dense<0.000000e+00> : vector<2x64xf32>
    %67 = tpu.matmul %65, %66, %cst_28 {dimension_numbers = #tpu.dot_dimension_numbers<[1], [0], [0], [1], [0, 0, 1, 1], [], []>} : vector<2x32xf32>, vector<32x64xf32>, vector<2x64xf32> -> vector<2x64xf32>
    %c0_29 = arith.constant 0 : index
    %c0_30 = arith.constant 0 : index
    %68 = vector.load %arg9[%c0_29, %c0_30] : memref<1x64xf32, #tpu.memory_space<vmem>>, vector<1x64xf32>
    %69 = vector.broadcast %68 : vector<1x64xf32> to vector<2x64xf32>
    %70 = arith.addf %67, %69 : vector<2x64xf32>
    %cst_31 = arith.constant 0.000000e+00 : f32
    %71 = vector.broadcast %cst_31 : f32 to vector<2x24xf32>
    %72 = tpu.concatenate %70, %65, %24, %71 in 1 : vector<2x64xf32>, vector<2x32xf32>, vector<2x8xf32>, vector<2x24xf32> -> vector<2x128xf32>
    %c0_32 = arith.constant 0 : index
    %c0_33 = arith.constant 0 : index
    %73 = vector.load %arg10[%c0_32, %c0_33] : memref<2x128xf32, #tpu.memory_space<vmem>>, vector<2x128xf32>
    tpu.vector_store %arg10[%c0_32, %c0_33], %72 {strides = array<i32>} : memref<2x128xf32, #tpu.memory_space<vmem>>, vector<2x128xf32>,
    return
  }
}

</mosaic_0001>

<bundles_post_ra>
// kernel: decoder_forward.1
= control target key start
LH: loop header
LB: loop body
LE: loop exit
PB: predicated region body
PF: predicated region fallthrough
CT: control target
= control target key end

     0   :  { %15 = vsyncpa [#allocation3], 0  ;;  %s780_s13 = smov [#allocation2]   ;;  %s1021_s0 = inlined_call_operand.vmem [shape: s32[2,1], index: 0, kind: input, shape index: {}]   ;;  %s1022_s1 = inlined_call_operand.vmem [shape: f32[1,2,32], index: 1, kind: input, shape index: {}]   ;;  %s1023_s2 = inlined_call_operand.vmem [shape: f32[2,8,32], index: 2, kind: input, shape index: {}]   ;;  %s1024_s3 = inlined_call_operand.vmem [shape: f32[64,32], index: 3, kind: input, shape index: {}]   ;;  %s1025_s4 = inlined_call_operand.vmem [shape: f32[64,96], index: 4, kind: input, shape index: {}]   ;;  %s1026_s5 = inlined_call_operand.vmem [shape: f32[32,96], index: 5, kind: input, shape index: {}]   ;;  %s1027_s6 = inlined_call_operand.vmem [shape: f32[1,96], index: 6, kind: input, shape index: {}]   ;;  %s1028_s7 = inlined_call_operand.vmem [shape: f32[1,96], index: 7, kind: input, shape index: {}]   ;;  %s1029_s8 = inlined_call_operand.hbm [shape: f32[32,64], index: 8, kind: input, shape index: {}]   ;;  %s1030_s9 = inlined_call_operand.vmem [shape: f32[1,64], index: 9, kind: input, shape index: {}]   ;;  %s1031_s10 = inlined_call_operand.vmem [shape: f32[2,128], index: 10, kind: output, shape index: {}]  }
   0x1   :  { %s37_s14 = sshll.u32 %s780_s13, 4  ;;  %s756_s17 = scalar_lea.hbm %s1029_s8, 512  ;;  %s38_s14 = int_to_ptr.vmem [resolvable:$true] %s37_s14 }
   0x2   :  { %p757_p0 = scmp.ne.s32.totalorder %s1029_s8, %s756_s17  ;;  %p760_p1 = scmp.lt.u32.totalorder %s756_s17, %s1029_s8 }
   0x4   :  { %p762_p2 = pnand %p760_p1, %p757_p0 }
   0x6   :  { %765 = shalt.err (!%p762_p2)
}
   0x7   :  { %s766_s22 = scalar_lea.vmem %s38_s14, 512  ;;  %p771_p4 = scmp.lt.s32.totalorder %s38_s14, %s38_s14 }
   0x8   :  { %p767_p3 = scmp.ne.s32.totalorder %s38_s14, %s766_s22  ;;  %p772_p5 = scmp.lt.s32.totalorder %s766_s22, %s766_s22 }
   0xa   :  { %p773_p6 = por %p772_p5, %p771_p4 }
   0xc   :  { %p774_p7 = pnand %p773_p6, %p767_p3 }
   0xe   :  { %777 = shalt.err (!%p774_p7)
}
   0xf   :  { %s781_s23 = smov 128   ;;  %s782_s24 = smov 8  }
  0x10   :  { %43 = dma.hbm_to_vmem [thread:$0]  %s1029_s8, 512, %s38_s14, [#allocation3], %s781_s23, %s781_s23, %s782_s24  }
  0x11   :  { %778 = dma.done.wait [#allocation3], 512  }
  0x12   :  { %779 = vsyncadd [#allocation3], 4294966784  ;;  %v50_v0 = vlaneseq  ;;  %v783_v1 = vmov 1966171168   ;;  %v864_v6 = vld [vmem:[%s1022_s1] sm:$0x3] }
  0x13   :  { %v145_v2 = vunpack.c.l.s4 %v783_v1  ;;  %v873_v11 = vld [vmem:[%s1023_s2] sm:$0xff]  ;;  %vm178_vm0 = vcmask 261120   ;;  %v879_v14 = vld [vmem:[%s1023_s2 + $0x8] sm:$0xff]  ;;  %vm195_vm1 = vcmask 1041409   ;;  %vm198_vm2 = vcmask 58368   ;;  %v60_v31 = vld [vmem:[%s1024_s3 + $0x10] sm:$0xff] }
  0x14   :  { %v858_v3 = vshrl.u32 %v50_v0, 7  ;;  %v886_v20 = vand.u32 127, %v50_v0  ;;  %v784_v28 = vmov 0   ;;  %v58_v29 = vld [vmem:[%s1024_s3] sm:$0xff]  ;;  %v59_v30 = vld [vmem:[%s1024_s3 + $0x8] sm:$0xff]  ;;  %v785_v32 = vmov 0.0|0.0  }
  0x15   :  { %v146_v4 = vunpack.c.0.s8 %v145_v2  ;;  %743 = vset.pattern.permute.xlu0 %v784_v28  ;;  %742 = vset.pattern.permute.xlu1 %v784_v28  ;;  %v696_v33 = vpack.c.bf16 %v59_v30, %v58_v29  ;;  %v61_v34 = vld [vmem:[%s1024_s3 + $0x18] sm:$0xff]  ;;  %v62_v44 = vld [vmem:[%s1024_s3 + $0x20] sm:$0xff]  ;;  %v63_v45 = vld [vmem:[%s1024_s3 + $0x28] sm:$0xff]  ;;  %vm786_vm3 = vmmov 0   ;;  %v787_v53 = vmov 0.0  }
  0x16   :  { %v868_v8 = vsub.s32 0, %v858_v3  ;;  %v189_v22 = vsub.s32 %v886_v20, %v858_v3  ;;  %695 = vmatprep.subr.bf16.mxu0 %v785_v32  ;;  %707 = vmatprep.subr.bf16.mxu1 %v785_v32  ;;  %v699_v35 = vpack.c.bf16 %v61_v34, %v60_v31  ;;  %v209_v36 = vsub.s32 1, %v858_v3  ;;  %v49_v49 = vld [vmem:[%s1021_s0] sm:$0x3]  ;;  %v64_v50 = vld [vmem:[%s1024_s3 + $0x30] sm:$0xff]  ;;  %v65_v51 = vld [vmem:[%s1024_s3 + $0x38] sm:$0xff] }
  0x17   :  { %v149_v5 = vsub.s32 %v146_v4, %v858_v3  ;;  %697 = vmatpush3.bf16.msra.mxu0 %v696_v33  ;;  %v702_v46 = vpack.c.bf16 %v63_v45, %v62_v44  ;;  %v705_v52 = vpack.c.bf16 %v65_v51, %v64_v50  ;;  %651 = vmatprep.mubr.msk.f32.mxu0 %vm786_vm3, %v787_v53  ;;  %vm66_vm4 = vcmask 523264   ;;  %s789_s0 = smov 64  }
  0x18   :  { %698 = vmatprep.subr.bf16.mxu0 %v785_v32  ;;  %670 = vmatprep.mubr.msk.f32.mxu1 %vm786_vm3, %v787_v53  ;;  %vm588_vm6 = vcmask 785408   ;;  %vm590_vm7 = vcmask 850944  }
  0x19   :  { %v150_v7 = vrot.slane %v864_v6, %v149_v5 }
  0x1b   :  { %v158_v9 = vrot.slane %v150_v7, %v149_v5  ;;  %v151_v10 = vcombine.high %v150_v7, %v150_v7  ;;  %700 = vmatpush3.bf16.msra.mxu0 %v699_v35  ;;  %v376_v7 = vld [vmem:[%s1026_s5 + $0x8] sm:$0xff] }
  0x1c   :  { %701 = vmatprep.subr.bf16.mxu0 %v785_v32 }
  0x1d   :  { %v169_v12 = vrot.slane %v158_v9, %v868_v8  ;;  %v165_v13 = vrot.slane %v151_v10, %v149_v5  ;;  %v375_v5 = vld [vmem:[%s1026_s5] sm:$0xff]  ;;  %v377_v9 = vld [vmem:[%s1026_s5 + $0x10] sm:$0xff] }
  0x1e   :  { %v720_v10 = vpack.c.bf16 %v376_v7, %v375_v5  ;;  %v489_v5 = vld [vmem:[#allocation2 + $0x10] sm:$0xff] }
  0x1f   :  { %v176_v15 = vmul.f32 %v169_v12, %v873_v11  ;;  %v173_v16 = vrot.slane %v165_v13, %v868_v8  ;;  %703 = vmatpush3.bf16.msra.mxu0 %v702_v46  ;;  %v287_v12 = vld [vmem:[%s1025_s4] sm:$0xff]  ;;  %v288_v13 = vld [vmem:[%s1025_s4 + $0x8] sm:$0xff] }
  0x20   :  { %704 = vmatprep.subr.bf16.mxu0 %v785_v32 }
  0x21   :  { %v179_v17 = vsel %vm178_vm0, %v176_v15, 0.0  ;;  %v177_v18 = vmul.f32 %v173_v16, %v879_v14  ;;  %v708_v15 = vpack.c.bf16 %v288_v13, %v287_v12  ;;  %v289_v16 = vld [vmem:[%s1025_s4 + $0x10] sm:$0xff] }
  0x22   :  { %180 = vadd.xlane.f32.xlu0 %v179_v17  ;;  %v290_v17 = vld [vmem:[%s1025_s4 + $0x18] sm:$0xff] }
  0x23   :  { %v182_v19 = vsel %vm178_vm0, %v177_v18, 0.0  ;;  %706 = vmatpush3.bf16.msra.mxu0 %v705_v52  ;;  %709 = vmatpush3.bf16.msra.mxu1 %v708_v15 }
  0x24   :  { %719 = vmatprep.subr.bf16.mxu0 %v785_v32  ;;  %710 = vmatprep.subr.bf16.mxu1 %v785_v32 }
  0x26   :  { %183 = vadd.xlane.f32.xlu0 %v182_v19  ;;  %v711_v19 = vpack.c.bf16 %v290_v17, %v289_v16 }
  0x28   :  { %712 = vmatpush3.bf16.msra.mxu1 %v711_v19 }
  0x29   :  { %713 = vmatprep.subr.bf16.mxu1 %v785_v32 }
  0xaf   :  { %v181_v21 = vpop.xlane.xlu0 %180 }
  0xb0   :  { %v190_v24 = vrot.slane %v181_v21, %v189_v22 }
  0xb3   :  { %v184_v23 = vpop.xlane.xlu0 %183 }
  0xb4   :  { %v194_v25 = vrot.slane %v184_v23, %v189_v22 }
  0xb6   :  { %v196_v26 = vsel %vm195_vm1, %v194_v25, %v190_v24  ;;  %v293_v24 = vld [vmem:[%s1025_s4 + $0x30] sm:$0xff]  ;;  %v294_v25 = vld [vmem:[%s1025_s4 + $0x38] sm:$0xff] }
  0xb7   :  { %v199_v27 = vsel %vm198_vm2, %v196_v26, -inf  ;;  %v717_v26 = vpack.c.bf16 %v294_v25, %v293_v24 }
  0xb8   :  { %200 = vmax.xlane.f32.xlu1 %v199_v27 }
 0x145   :  { %v201_v37 = vpop.xlane.xlu1 %200 }
 0x146   :  { %v206_v38 = vrot.slane %v201_v37, %v868_v8  ;;  %v210_v39 = vrot.slane %v201_v37, %v209_v36 }
 0x148   :  { %v213_v40 = vsub.f32 %v181_v21, %v206_v38  ;;  %v214_v41 = vsub.f32 %v184_v23, %v210_v39  ;;  %v291_v21 = vld [vmem:[%s1025_s4 + $0x20] sm:$0xff] }
 0x14a   :  { %v215_v42 = vmul.f32 1.442695, %v213_v40  ;;  %v217_v43 = vmul.f32 1.442695, %v214_v41 }
 0x14c   :  { %744 = vpow2.f32 %v215_v42 }
 0x14d   :  { %746 = vpow2.f32 %v217_v43 }
 0x156   :  { %v745_v47 = vpop.eup %744 }
 0x157   :  { %v747_v48 = vpop.eup %746  ;;  %222 = vperm.xlu1 %742, %v745_v47  }
 0x158   :  { %225 = vperm.xlu0 %743, %v747_v48  }
 0x15b   :  { %53 = vperm.xlu1 %742, %v49_v49  }
 0x1d6   :  { %v223_v54 = vpop.permute.xlu1 %222 }
 0x1d7   :  { %v226_v55 = vpop.permute.xlu0 %225  ;;  %v230_v56 = vrot.slane %v223_v54, %v189_v22  ;;  %v600_v54 = vld [vmem:[%s1027_s6] ss:$0 sm:$0xff]  ;;  %s790_s6 = smov 96  }
 0x1d8   :  { %v234_v57 = vrot.slane %v226_v55, %v189_v22  ;;  %v292_v22 = vld [vmem:[%s1025_s4 + $0x28] sm:$0xff]  ;;  %s788_s4 = smov 32  }
 0x1d9   :  { %v714_v23 = vpack.c.bf16 %v292_v22, %v291_v21 }
 0x1da   :  { %v54_v58 = vpop.permute.xlu1 %53  ;;  %v235_v59 = vsel %vm195_vm1, %v234_v57, %v230_v56 }
 0x1db   :  { %vm55_vm5 = vcmp.eq.s32.totalorder %v886_v20, %v54_v58  ;;  %v237_v60 = vsel %vm198_vm2, %v235_v59, 0.0  ;;  %715 = vmatpush3.bf16.msra.mxu1 %v714_v23 }
 0x1dc   :  { %v598_v61 = vsel %vm55_vm5, 1.0, %v787_v53  ;;  %238 = vadd.xlane.f32.xlu1 %v237_v60  ;;  %716 = vmatprep.subr.bf16.mxu1 %v785_v32 }
 0x1dd   :  { %652 = vmatmul.mubr.msk.f32.vlgmr.msra.gmra.mrb[0].mxu0 %vm66_vm4, %v598_v61 }
 0x1de   :  { %681 = vmatprep.mubr.msk.f32.mxu0 %vm786_vm3, %v787_v53  ;;  %721 = vmatpush3.bf16.msra.mxu0 %v720_v10 }
 0x1df   :  { %722 = vmatprep.subr.bf16.mxu0 %v785_v32  ;;  %718 = vmatpush3.bf16.msra.mxu1 %v717_v26 }
 0x1e0   :  { %725 = vmatprep.subr.bf16.mxu1 %v785_v32 }
 0x269   :  { %v239_v62 = vpop.xlane.xlu1 %238 }
 0x26a   :  { %748 = vrcp.f32 %v239_v62 }
 0x274   :  { %v749_v63 = vpop.eup %748 }
 0x275   :  { %v245_v0 = vrot.slane %v749_v63, %v868_v8  ;;  %v249_v2 = vrot.slane %v749_v63, %v209_v36  ;;  %v378_v8 = vld [vmem:[%s1026_s5 + $0x18] sm:$0xff] }
 0x276   :  { %v723_v18 = vpack.c.bf16 %v378_v8, %v377_v9  ;;  %v490_v9 = vld [vmem:[#allocation2 + $0x18] sm:$0xff] }
 0x277   :  { %v252_v1 = vmul.f32 %v745_v47, %v245_v0  ;;  %v253_v4 = vmul.f32 %v747_v48, %v249_v2  ;;  %v729_v10 = vpack.c.bf16 %v490_v9, %v489_v5 }
 0x278   :  { %724 = vmatpush3.bf16.msra.mxu0 %v723_v18 }
 0x279   :  { %256 = vperm.xlu0 %743, %v252_v1  }
 0x27b   :  { %682 = vmatmul.mubr.msk.f32.vlgmr.msra.gmra.mrb[2].mxu0 %vm178_vm0, %v864_v6 }
 0x27d   :  { %261 = vperm.xlu0 %743, %v253_v4   ;;  %v488_v4 = vld [vmem:[#allocation2 + $0x8] sm:$0xff] }
 0x2b0   :  { %v136_v27 = vpop.f32.mrb[0].mxu0 }
 0x2b1   :  { %v653_v28 = vpop.f32.mrb[1].mxu0 }
 0x2f8   :  { %v982_v29 = vpop.permute.xlu0 %256 }
 0x2f9   :  { %v264_v30 = vmul.f32 %v982_v29, %v873_v11 }
 0x2fb   :  { %v266_v31 = vsel %vm178_vm0, %v264_v30, 0.0 }
 0x2fc   :  { %v267_v33 = vrot.slane %v266_v31, 4  ;;  %v987_v34 = vpop.permute.xlu0 %261 }
 0x2fd   :  { %v265_v35 = vmul.f32 %v987_v34, %v879_v14  ;;  %v602_v14 = vld [vmem:[%s1028_s7] ss:$0 sm:$0xff] }
 0x2fe   :  { %v268_v36 = vadd.f32 %v267_v33, %v266_v31 }
 0x2ff   :  { %v273_v37 = vsel %vm178_vm0, %v265_v35, 0.0 }
 0x300   :  { %v269_v38 = vrot.slane %v268_v36, 2  ;;  %v274_v39 = vrot.slane %v273_v37, 4 }
 0x302   :  { %v270_v40 = vadd.f32 %v269_v38, %v268_v36  ;;  %v275_v41 = vadd.f32 %v274_v39, %v273_v37 }
 0x304   :  { %v276_v42 = vrot.slane %v275_v41, 2  ;;  %v271_v44 = vrot.slane %v270_v40, 1 }
 0x306   :  { %v277_v43 = vadd.f32 %v276_v42, %v275_v41  ;;  %v272_v11 = vadd.f32 %v271_v44, %v270_v40 }
 0x308   :  { %v278_v45 = vrot.slane %v277_v43, 1 }
 0x30a   :  { %v279_v46 = vadd.f32 %v278_v45, %v277_v43 }
 0x30c   :  { %v282_v47 = vsel %vm195_vm1, %v279_v46, %v272_v11 }
 0x30d   :  { %283 = vrot.lane.b32.xlu0 %v282_v47, %s788_s4 }
 0x34e   :  { %v454_v48 = vpop.f32.mrb[2].mxu0 }
 0x34f   :  { %v455_v49 = vadd.f32 %v602_v14, %v454_v48  ;;  %v683_v50 = vpop.f32.mrb[3].mxu0 }
 0x351   :  { %466 = vrot.lane.b32.xlu1 %v455_v49, %s789_s0 }
 0x37f   :  { %v284_v51 = vpop.permute.xlu0 %283 }
 0x380   :  { %v286_v52 = vsel %vm178_vm0, %v136_v27, %v284_v51 }
 0x381   :  { %671 = vmatmul.mubr.msk.f32.vlgmr.msra.gmra.mrb[0].mxu1 %vm66_vm4, %v286_v52 }
 0x382   :  { %692 = vmatprep.mubr.msk.f32.mxu1 %vm786_vm3, %v787_v53  ;;  %v487_v53 = vld [vmem:[#allocation2] sm:$0xff] }
 0x383   :  { %v726_v7 = vpack.c.bf16 %v488_v4, %v487_v53 }
 0x385   :  { %727 = vmatpush3.bf16.msra.mxu1 %v726_v7 }
 0x386   :  { %728 = vmatprep.subr.bf16.mxu1 %v785_v32  ;;  %v576_v32 = vadd.s32 4294967200, %v886_v20 }
 0x388   :  { %v579_v21 = vsub.s32 %v576_v32, %v858_v3 }
 0x389   :  { %730 = vmatpush3.bf16.msra.mxu1 %v729_v10 }
 0x38a   :  { %v584_v22 = vrot.slane %v987_v34, %v579_v21  ;;  %v580_v24 = vrot.slane %v982_v29, %v579_v21 }
 0x38c   :  { %v585_v28 = vsel %vm195_vm1, %v584_v22, %v580_v24 }
 0x3c3   :  { %v467_v62 = vpop.permute.xlu1 %466 }
 0x454   :  { %v371_v55 = vpop.f32.mrb[0].mxu1 }
 0x455   :  { %v372_v56 = vadd.f32 %v600_v54, %v371_v55  ;;  %v672_v57 = vpop.f32.mrb[1].mxu1 }
 0x457   :  { %v458_v58 = vadd.f32 %v455_v49, %v372_v56 }
 0x459   :  { %v604_v59 = vmul.f32 -1.442695, %v458_v58 }
 0x45b   :  { %750 = vpow2.f32 %v604_v59 }
 0x465   :  { %v751_v60 = vpop.eup %750 }
 0x466   :  { %v462_v61 = vadd.f32 1.0, %v751_v60 }
 0x468   :  { %752 = vrcp.f32 %v462_v61 }
 0x472   :  { %v753_v63 = vpop.eup %752 }
 0x473   :  { %v469_v0 = vmul.f32 %v753_v63, %v467_v62  ;;  %v476_v13 = vsub.f32 1.0, %v753_v63 }
 0x475   :  { %471 = vrot.lane.b32.xlu0 %v469_v0, %s789_s0 }
 0x4e7   :  { %v472_v1 = vpop.permute.xlu0 %471 }
 0x4e8   :  { %v474_v2 = vadd.f32 %v472_v1, %v372_v56 }
 0x4ea   :  { %754 = vtanh.f32 %v474_v2 }
 0x4f4   :  { %v755_v8 = vpop.eup %754 }
 0x4f5   :  { %478 = vrot.lane.b32.xlu0 %v755_v8, %s790_s6 }
 0x4f9   :  { %482 = vrot.lane.b32.xlu0 %v864_v6, %s788_s4  ;;  %v605_v6 = vld [vmem:[%s1030_s9] ss:$0 sm:$0xff] }
 0x567   :  { %v479_v12 = vpop.permute.xlu0 %478 }
 0x568   :  { %v481_v16 = vmul.f32 %v479_v12, %v476_v13 }
 0x56b   :  { %v483_v15 = vpop.permute.xlu0 %482 }
 0x56c   :  { %v485_v17 = vmul.f32 %v753_v63, %v483_v15 }
 0x56e   :  { %v486_v18 = vadd.f32 %v485_v17, %v481_v16 }
 0x570   :  { %573 = vrot.lane.b32.xlu1 %v486_v18, %s788_s4  ;;  %499 = vrot.lane.b32.xlu0 %v486_v18, %s790_s6 }
 0x5e2   :  { %v500_v19 = vpop.permute.xlu0 %499  ;;  %v574_v27 = vpop.permute.xlu1 %573 }
 0x5e3   :  { %693 = vmatmul.mubr.msk.f32.vlgmr.msra.gmra.mrb[2].mxu1 %vm178_vm0, %v500_v19 }
 0x6b6   :  { %v569_v23 = vpop.f32.mrb[2].mxu1 }
 0x6b7   :  { %v570_v25 = vadd.f32 %v605_v6, %v569_v23  ;;  %v694_v26 = vpop.f32.mrb[3].mxu1 }
 0x6b9   :  { %v587_v20 = vsel %vm66_vm4, %v570_v25, %v574_v27 }
 0x6ba   :  { %v589_v30 = vsel %vm588_vm6, %v587_v20, %v585_v28 }
 0x6bb   :  { %v591_v3 = vsel %vm590_vm7, %v589_v30, 0.0 }
 0x6bc   :  { %592 = vst [vmem:[%s1031_s10] sm:$0x3] %v591_v3 }
 0x6bd   :  { %597 = vsyncpa [#allocation3], 1 }

</bundles_post_ra>
